<compile_context>
chip_gen: v6e
topology: v6e:2x2x1
jax: 0.10.0
libtpu: 0.0.40
codegen_flags: <defaults>
</compile_context>

<pallas_src>
import functools

import jax
import jax.numpy as jnp
from jax.experimental import pallas as pl
from jax.experimental.pallas import tpu as pltpu

LANES = 128
SUBLANES = 8
MAX_BLOCK_ROWS = 1024   # (1024,128) f32 = 512 KiB/input/buffer -> ~2 MiB double-buffered; fits all gens
NUM_SHARDS = 2          # leading 'parallel' grid axis -> both TensorCores on v7x


def _loss_kernel(out_ref, gt_ref, loss_ref, acc_ref, *, mode, block_rows,
                 blocks_per_shard, valid_rows, needs_mask):
    i = pl.program_id(1)

    @pl.when(i == 0)
    def _():
        acc_ref[...] = jnp.zeros_like(acc_ref)

    p = out_ref[...].astype(jnp.float32)
    y = gt_ref[...].astype(jnp.float32)

    if mode == "mse":
        d = p - y
        term = d * d
    else:  # bce
        # PyTorch BCELoss clamps the log terms at -100 to avoid -inf.
        log_p = jnp.maximum(jnp.log(p), -100.0)
        log_1mp = jnp.maximum(jnp.log1p(-p), -100.0)  # log1p(-p): better precision near p -> 1
        term = -(y * log_p + (1.0 - y) * log_1mp)

    if needs_mask:
        # Zero out rows beyond the real extent (partial last block / overshoot shard blocks).
        s = pl.program_id(0)
        row0 = (s * blocks_per_shard + i) * block_rows
        local_rows = jax.lax.broadcasted_iota(jnp.int32, (block_rows, LANES), 0)
        term = jnp.where(row0 + local_rows < valid_rows, term, 0.0)

    # Pure VPU per-step accumulation into a full-width VMEM accumulator.
    acc_ref[...] += term

    @pl.when(i == pl.num_programs(1) - 1)
    def _():
        loss_ref[0, 0] = jnp.sum(acc_ref[...])


def _to_rows(x, pad_value):
    """Flatten to [R, 128] in native dtype; pad with a loss-neutral value only if needed."""
    flat = x.reshape(-1)
    n = flat.shape[0]
    tile = SUBLANES * LANES
    rem = n % tile
    if rem:
        flat = jnp.pad(flat, (0, tile - rem), constant_values=pad_value)
    return flat.reshape(-1, LANES)


@functools.partial(jax.jit, static_argnames=("distribution",))
def reconstruction_loss(output, gt, distribution="gaussian"):
    if distribution in ("gaussian", "mse"):
        mode = "mse"
        pad_out, pad_gt = 0.0, 0.0      # (0-0)^2 contributes 0
    elif distribution == "binomial":
        mode = "bce"
        pad_out, pad_gt = 1.0, 1.0      # y*log(p)=0, (1-y)*clamped_log=0 -> contributes 0
    else:
        raise ValueError(f"unknown distribution {distribution!r}")

    out2d = _to_rows(output, pad_out)
    gt2d = _to_rows(gt, pad_gt)
    rows = out2d.shape[0]               # multiple of 8

    block_rows = min(MAX_BLOCK_ROWS, rows)
    total_blocks = pl.cdiv(rows, block_rows)
    num_shards = NUM_SHARDS if total_blocks >= NUM_SHARDS else 1
    blocks_per_shard = pl.cdiv(total_blocks, num_shards)
    covered_blocks = num_shards * blocks_per_shard
    needs_mask = (covered_blocks * block_rows) != rows
    needs_clamp = covered_blocks != total_blocks

    if needs_clamp:
        def in_map(s, i):
            return (jnp.minimum(s * blocks_per_shard + i, total_blocks - 1), 0)
    else:
        def in_map(s, i):
            return (s * blocks_per_shard + i, 0)

    n_elems = output.size
    bytes_accessed = (out2d.size * out2d.dtype.itemsize
                      + gt2d.size * gt2d.dtype.itemsize
                      + num_shards * 4)
    if mode == "mse":
        cost = pl.CostEstimate(flops=3 * n_elems, transcendentals=0,
                               bytes_accessed=bytes_accessed)
    else:
        cost = pl.CostEstimate(flops=6 * n_elems, transcendentals=2 * n_elems,
                               bytes_accessed=bytes_accessed)

    kernel = functools.partial(
        _loss_kernel, mode=mode, block_rows=block_rows,
        blocks_per_shard=blocks_per_shard, valid_rows=rows, needs_mask=needs_mask)

    partial_sums = pl.pallas_call(
        kernel,
        out_shape=jax.ShapeDtypeStruct((num_shards, 1), jnp.float32),
        grid_spec=pltpu.PrefetchScalarGridSpec(
            num_scalar_prefetch=0,
            grid=(num_shards, blocks_per_shard),
            in_specs=[
                pl.BlockSpec((block_rows, LANES), in_map),
                pl.BlockSpec((block_rows, LANES), in_map),
            ],
            out_specs=pl.BlockSpec((1, 1), lambda s, i: (s, 0),
                                   memory_space=pltpu.SMEM),
            scratch_shapes=[pltpu.VMEM((block_rows, LANES), jnp.float32)],
        ),
        compiler_params=pltpu.CompilerParams(
            dimension_semantics=("parallel", "arbitrary"),
        ),
        cost_estimate=cost,
    )(out2d, gt2d)

    return jnp.sum(partial_sums)


def _mse_ref(o, g):
    return jnp.sum((o - g) ** 2)


def _bce_ref(o, g):
    return -jnp.sum(g * jnp.log(o) + (1.0 - g) * jnp.log(1.0 - o))


if __name__ == "__main__":
    key = jax.random.PRNGKey(0)

    # Primary small NCHW reconstruction tensors: batch=2, channels=4, spatial=16x16.
    k1, k2, k3, k4, k5, k6 = jax.random.split(key, 6)
    shape = (2, 4, 16, 16)
    output = jax.random.uniform(k1, shape, jnp.float32, minval=0.01, maxval=0.99)
    gt = jax.random.uniform(k2, shape, jnp.float32, minval=0.0, maxval=1.0)

    mse = reconstruction_loss(output, gt, distribution="gaussian")
    jax.block_until_ready(mse)
    assert jnp.allclose(mse, _mse_ref(output, gt), rtol=1e-5, atol=1e-4), (mse, _mse_ref(output, gt))

    bce = reconstruction_loss(output, gt, distribution="binomial")
    jax.block_until_ready(bce)
    assert jnp.allclose(bce, _bce_ref(output, gt), rtol=1e-4, atol=1e-3), (bce, _bce_ref(output, gt))

    # Ragged (non-1024-multiple) shape: exercises the neutral-pad fallback path.
    shape_r = (2, 3, 15, 15)
    out_r = jax.random.uniform(k3, shape_r, jnp.float32, minval=0.01, maxval=0.99)
    gt_r = jax.random.uniform(k4, shape_r, jnp.float32, minval=0.0, maxval=1.0)
    bce_r = reconstruction_loss(out_r, gt_r, distribution="binomial")
    jax.block_until_ready(bce_r)
    assert jnp.allclose(bce_r, _bce_ref(out_r, gt_r), rtol=1e-4, atol=1e-3), (bce_r, _bce_ref(out_r, gt_r))

    # Multi-block shape with a partial last block: exercises 2-shard grid + iota masking.
    shape_m = (3, 5, 100, 128)   # 192000 elements -> 1504 rows -> 2 blocks of 1024 rows
    out_m = jax.random.uniform(k5, shape_m, jnp.float32, minval=0.01, maxval=0.99)
    gt_m = jax.random.uniform(k6, shape_m, jnp.float32, minval=0.0, maxval=1.0)
    mse_m = reconstruction_loss(out_m, gt_m, distribution="gaussian")
    jax.block_until_ready(mse_m)
    assert jnp.allclose(mse_m, _mse_ref(out_m, gt_m), rtol=1e-4, atol=1e-2), (mse_m, _mse_ref(out_m, gt_m))

    print("KERNEL_OK")
</pallas_src>

<mosaic_0001>
module attributes {stable_mosaic.version = 11 : i64} {
  func.func @_loss_kernel(%arg0: i32, %arg1: i32, %arg2: memref<16x128xf32, #tpu.memory_space<vmem>>, %arg3: memref<16x128xf32, #tpu.memory_space<vmem>>, %arg4: memref<1x1xf32, #tpu.memory_space<smem>>, %arg5: memref<16x128xf32, #tpu.memory_space<vmem>>) attributes {dimension_semantics = [#tpu.dimension_semantics<parallel>, #tpu.dimension_semantics<arbitrary>], iteration_bounds = array<i64: 1, 1>, scalar_prefetch = 0 : i64, scratch_operands = 1 : i64, tpu.core_type = #tpu.core_type<tc>, window_params = [{transform_indices = @transform_0, window_bounds = array<i64: 16, 128>}, {transform_indices = @transform_1, window_bounds = array<i64: 16, 128>}, {transform_indices = @transform_2, window_bounds = array<i64: 1, 1>}]} {
    %c0_i32 = arith.constant 0 : i32
    %0 = arith.cmpi eq, %arg1, %c0_i32 : i32
    %1 = arith.extui %0 : i1 to i32
    %c0_i32_0 = arith.constant 0 : i32
    %2 = arith.cmpi ne, %1, %c0_i32_0 : i32
    scf.if %2 {
      %cst = arith.constant 0.000000e+00 : f32
      %13 = vector.broadcast %cst : f32 to vector<16x128xf32>
      %c0_10 = arith.constant 0 : index
      %c0_11 = arith.constant 0 : index
      %14 = vector.load %arg5[%c0_10, %c0_11] : memref<16x128xf32, #tpu.memory_space<vmem>>, vector<16x128xf32>
      tpu.vector_store %arg5[%c0_10, %c0_11], %13 {strides = array<i32>} : memref<16x128xf32, #tpu.memory_space<vmem>>, vector<16x128xf32>,
    } else {
    }
    %c0 = arith.constant 0 : index
    %c0_1 = arith.constant 0 : index
    %3 = vector.load %arg2[%c0, %c0_1] : memref<16x128xf32, #tpu.memory_space<vmem>>, vector<16x128xf32>
    %c0_2 = arith.constant 0 : index
    %c0_3 = arith.constant 0 : index
    %4 = vector.load %arg3[%c0_2, %c0_3] : memref<16x128xf32, #tpu.memory_space<vmem>>, vector<16x128xf32>
    %5 = arith.subf %3, %4 : vector<16x128xf32>
    %6 = arith.mulf %5, %5 : vector<16x128xf32>
    %c0_4 = arith.constant 0 : index
    %c0_5 = arith.constant 0 : index
    %7 = vector.load %arg5[%c0_4, %c0_5] : memref<16x128xf32, #tpu.memory_space<vmem>>, vector<16x128xf32>
    %8 = arith.addf %7, %6 : vector<16x128xf32>
    %c0_6 = arith.constant 0 : index
    %c0_7 = arith.constant 0 : index
    %9 = vector.load %arg5[%c0_6, %c0_7] : memref<16x128xf32, #tpu.memory_space<vmem>>, vector<16x128xf32>
    tpu.vector_store %arg5[%c0_6, %c0_7], %8 {strides = array<i32>} : memref<16x128xf32, #tpu.memory_space<vmem>>, vector<16x128xf32>,
    %c0_i32_8 = arith.constant 0 : i32
    %10 = arith.cmpi eq, %arg1, %c0_i32_8 : i32
    %11 = arith.extui %10 : i1 to i32
    %c0_i32_9 = arith.constant 0 : i32
    %12 = arith.cmpi ne, %11, %c0_i32_9 : i32
    scf.if %12 {
      %c0_10 = arith.constant 0 : index
      %c0_11 = arith.constant 0 : index
      %13 = vector.load %arg5[%c0_10, %c0_11] : memref<16x128xf32, #tpu.memory_space<vmem>>, vector<16x128xf32>
      %14 = vector.shape_cast %13 : vector<16x128xf32> to vector<1x16x128xf32>
      %cst = arith.constant dense<0.000000e+00> : vector<1xf32>
      %15 = vector.multi_reduction <add>, %14, %cst [1, 2] : vector<1x16x128xf32> to vector<1xf32>
      %16 = vector.shape_cast %15 : vector<1xf32> to vector<1x1x1xf32>
      %17 = vector.extract %16[0, 0, 0] : f32 from vector<1x1x1xf32>
      %c0_12 = arith.constant 0 : index
      %c0_13 = arith.constant 0 : index
      %18 = memref.load %arg4[%c0_12, %c0_13] : memref<1x1xf32, #tpu.memory_space<smem>>
      memref.store %17, %arg4[%c0_12, %c0_13] : memref<1x1xf32, #tpu.memory_space<smem>>
    } else {
    }
    return
  }
  func.func @transform_0(%arg0: i32, %arg1: i32) -> (i32, i32) {
    %c1_i32 = arith.constant 1 : i32
    %0 = arith.muli %arg0, %c1_i32 : i32
    %1 = arith.addi %0, %arg1 : i32
    %c0_i32 = arith.constant 0 : i32
    %c0_i32_0 = arith.constant 0 : i32
    return %1, %c0_i32 : i32, i32
  }
  func.func @transform_1(%arg0: i32, %arg1: i32) -> (i32, i32) {
    %c1_i32 = arith.constant 1 : i32
    %0 = arith.muli %arg0, %c1_i32 : i32
    %1 = arith.addi %0, %arg1 : i32
    %c0_i32 = arith.constant 0 : i32
    %c0_i32_0 = arith.constant 0 : i32
    return %1, %c0_i32 : i32, i32
  }
  func.func @transform_2(%arg0: i32, %arg1: i32) -> (i32, i32) {
    %c0_i32 = arith.constant 0 : i32
    %c0_i32_0 = arith.constant 0 : i32
    return %arg0, %c0_i32 : i32, i32
  }
}

</mosaic_0001>

<bundles_post_ra>
// kernel: reconstruction_loss.1
= control target key start
LH: loop header
LB: loop body
LE: loop exit
PB: predicated region body
PF: predicated region fallthrough
CT: control target
= control target key end

     0   :  { %s162_s0 = inlined_call_operand.vmem [shape: f32[16,128], index: 0, kind: input, shape index: {}]   ;;  %s163_s1 = inlined_call_operand.vmem [shape: f32[16,128], index: 1, kind: input, shape index: {}]   ;;  %s164_s2 = inlined_call_operand.hbm [shape: f32[1,1], index: 2, kind: output, shape index: {}]  }
   0x1   :  { %v62_v0 = vld [vmem:[%s162_s0] sm:$0xff]  ;;  %v63_v1 = vld [vmem:[%s162_s0 + $0x8] sm:$0xff] }
   0x2   :  { %v64_v2 = vld [vmem:[%s163_s1] sm:$0xff]  ;;  %v65_v3 = vld [vmem:[%s163_s1 + $0x8] sm:$0xff] }
   0x3   :  { %v66_v4 = vsub.f32 %v62_v0, %v64_v2 }
   0x4   :  { %7 = vsyncpa [#allocation4], 0  ;;  %v67_v5 = vsub.f32 %v63_v1, %v65_v3  ;;  %s131_s17 = smov [#allocation3]  }
   0x5   :  { %v68_v6 = vmul.f32 %v66_v4, %v66_v4 }
   0x6   :  { %v69_v7 = vmul.f32 %v67_v5, %v67_v5 }
   0x8   :  { %v81_v8 = vadd.f32 %v69_v7, %v68_v6 }
   0xa   :  { %82 = vadd.xlane.f32.xlu0 %v81_v8 }
  0x93   :  { %v83_v9 = vpop.xlane.xlu0 %82 }
  0x94   :  { %v84_v10 = vrot.slane %v83_v9, 4 }
  0x96   :  { %v85_v11 = vadd.f32 %v84_v10, %v83_v9 }
  0x98   :  { %v86_v12 = vrot.slane %v85_v11, 2 }
  0x9a   :  { %v87_v13 = vadd.f32 %v86_v12, %v85_v11 }
  0x9c   :  { %v88_v14 = vrot.slane %v87_v13, 1 }
  0x9e   :  { %v89_v15 = vadd.f32 %v88_v14, %v87_v13 }
  0xa0   :  { %118 = vpush %v89_v15 }
  0xd1   :  { %s119_s0 = spop %118 }
  0xd2   :  { %92 = sst [smem:[#allocation3]] %s119_s0 }
  0xd3   :  { %100 = dma.smem_to_hbm %s131_s17, 16, %s164_s2, [#allocation4]  }
  0xd4   :  { %129 = dma.done.wait [#allocation4], 16  }
  0xd5   :  { %130 = vsyncadd [#allocation4], 4294967280 }
  0xd6   :  { %104 = sfence }
  0xd7   :  { %105 = vsyncpa [#allocation4], 1 }

</bundles_post_ra>
